<compile_context>
chip_gen: v5e
topology: v5e:2x2
jax: 0.10.0
libtpu: 0.0.40
codegen_flags: <defaults>
</compile_context>

<pallas_src>
import functools

import jax
import jax.numpy as jnp
from jax.experimental import pallas as pl
from jax.experimental.pallas import tpu as pltpu


KSIZE = 5
STRIDE = 2
C1_OUT = 16
C2_OUT = 32
FC1_OUT = 256


def _cdiv(a, b):
    return (a + b - 1) // b


def _round_up(n, m):
    return _cdiv(n, m) * m


def _conv_out_hw(h, w):
    return (h - KSIZE) // STRIDE + 1, (w - KSIZE) // STRIDE + 1


# ---------------------------------------------------------------------------
# Fused whole-network kernel (one grid step = one batch tile)
# ---------------------------------------------------------------------------
def _dqn_fused_kernel(p1_ref, w1_ref, b1_ref, w2_ref, b2_ref,
                      wf1_ref, bf1_ref, wf2_ref, bf2_ref,
                      out_ref, y1_ref, *, tb, HP, WPp, oh2, ow2):
    s2 = oh2 * ow2
    NG = wf1_ref.shape[0]
    G = wf1_ref.shape[1] // C2_OUT
    M1 = p1_ref.shape[0]                     # tb * NR  (NR = 4*HP*WPp rows/image)
    CH = 4096 if M1 > 4096 else M1           # conv1 M-chunk: bounds f32 temporaries

    # ---- conv1 + ReLU: one (chunked) large-M MXU matmul over the whole tile.
    # Rows are ordered (parity plane, plane row, plane col, image-in-tile).
    for r0 in range(0, M1, CH):
        n = min(CH, M1 - r0)
        a = jnp.dot(p1_ref[r0:r0 + n, :], w1_ref[...],
                    preferred_element_type=jnp.float32)
        y1_ref[r0:r0 + n, :] = jnp.maximum(a + b1_ref[...], 0.0).astype(y1_ref.dtype)

    # ---- conv2 + ReLU: 25 tap matmuls, each with M = tb*oh2*WPp.
    # Tap (kh, kw) reads parity plane (kh&1, kw&1) shifted by (kh//2, kw//2);
    # the column shift is folded into the contiguous row-window start, so no
    # transposes / reshapes are needed.  Rows with plane-col >= ow2 carry
    # garbage but are never consumed by fc1.
    m2 = oh2 * WPp * tb
    acc2 = jnp.zeros((m2, C2_OUT), jnp.float32)
    for kh in range(KSIZE):
        for kw in range(KSIZE):
            t = kh * KSIZE + kw
            plane = (kh % 2) * 2 + (kw % 2)
            start = ((plane * HP + kh // 2) * WPp + kw // 2) * tb
            win = y1_ref[start:start + m2, :]                    # (m2, 16) bf16
            acc2 = acc2 + jnp.dot(win, w2_ref[t],
                                  preferred_element_type=jnp.float32)
    y2 = jnp.maximum(acc2 + b2_ref[...], 0.0).astype(jnp.bfloat16)

    # ---- fc1 + ReLU: grouped matmuls with K = G*32 (full MXU depth for G=8).
    h = jnp.zeros((tb, FC1_OUT), jnp.float32)
    zfill = jnp.zeros((tb, C2_OUT), jnp.bfloat16)
    for g in range(NG):
        parts = []
        for u in range(G):
            s = g * G + u
            if s < s2:
                o, q = divmod(s, ow2)
                r0 = (o * WPp + q) * tb
                parts.append(y2[r0:r0 + tb, :])                  # (tb, 32)
            else:
                parts.append(zfill)                              # zero weight rows
        lhs = parts[0] if G == 1 else jnp.concatenate(parts, axis=-1)
        h = h + jnp.dot(lhs, wf1_ref[g], preferred_element_type=jnp.float32)
    h1 = jnp.maximum(h + bf1_ref[...], 0.0).astype(jnp.bfloat16)

    # ---- fc2: lane-dense padded output (only HBM store of the kernel).
    out_ref[...] = (jnp.dot(h1, wf2_ref[...], preferred_element_type=jnp.float32)
                    + bf2_ref[...]).astype(out_ref.dtype)


# ---------------------------------------------------------------------------
# Parameter init (PyTorch layouts) and one-time kernel-layout preparation
# ---------------------------------------------------------------------------
def init_params(key, input_shape, num_actions):
    c, h, w = input_shape
    oh1, ow1 = _conv_out_hw(h, w)
    oh2, ow2 = _conv_out_hw(oh1, ow1)
    conv_out = C2_OUT * oh2 * ow2

    def uniform(k, shape, fan_in):
        bound = 1.0 / jnp.sqrt(jnp.float32(fan_in))
        return jax.random.uniform(k, shape, jnp.float32, -bound, bound)

    ks = jax.random.split(key, 8)
    return {
        # PyTorch conv weight layout: (Cout, Cin, KH, KW); linear: (out, in)
        "conv1_w": uniform(ks[0], (C1_OUT, c, KSIZE, KSIZE), c * KSIZE * KSIZE),
        "conv1_b": uniform(ks[1], (C1_OUT,), c * KSIZE * KSIZE),
        "conv2_w": uniform(ks[2], (C2_OUT, C1_OUT, KSIZE, KSIZE), C1_OUT * KSIZE * KSIZE),
        "conv2_b": uniform(ks[3], (C2_OUT,), C1_OUT * KSIZE * KSIZE),
        "fc1_w": uniform(ks[4], (FC1_OUT, conv_out), conv_out),
        "fc1_b": uniform(ks[5], (FC1_OUT,), conv_out),
        "fc2_w": uniform(ks[6], (num_actions, FC1_OUT), FC1_OUT),
        "fc2_b": uniform(ks[7], (num_actions,), FC1_OUT),
    }


def prepare_params(params, input_shape, fc1_group=8):
    """One-time conversion of PyTorch-layout params into kernel layouts.

    Folds /255 into conv1's weight, pre-transposes all weights, pre-permutes
    fc1's weight into (C,H,W)-flatten order grouped G positions per matmul,
    pads fc2's N to 128 (lane-dense output), and casts matmul operands to
    bf16 (f32 accumulation in-kernel).
    """
    c, h, w = input_shape
    oh1, ow1 = _conv_out_hw(h, w)
    oh2, ow2 = _conv_out_hw(oh1, ow1)
    s2 = oh2 * ow2
    k1 = c * KSIZE * KSIZE
    num_actions = params["fc2_w"].shape[0]
    nap = _round_up(num_actions, 128)
    G = max(1, min(fc1_group, s2))
    NG = _cdiv(s2, G)

    f32, bf16 = jnp.float32, jnp.bfloat16

    # conv1 weight: (k1, 16), K ordered (c-major, kh, kw); /255 folded in.
    w1 = (params["conv1_w"].reshape(C1_OUT, k1).T.astype(f32) * (1.0 / 255.0)).astype(bf16)
    b1 = params["conv1_b"].reshape(1, C1_OUT).astype(f32)

    # conv2 weight: (25, 16, 32), tap-major.
    w2 = (params["conv2_w"].transpose(2, 3, 1, 0)
          .reshape(KSIZE * KSIZE, C1_OUT, C2_OUT).astype(bf16))
    b2 = params["conv2_b"].reshape(1, C2_OUT).astype(f32)

    # fc1 weight: PyTorch (C,H,W) flatten -> position-major, channel-minor
    # blocks, grouped G positions per matmul (K = G*32), zero-padded tail.
    assert params["fc1_w"].shape[1] == C2_OUT * s2
    wf1 = (params["fc1_w"].reshape(FC1_OUT, C2_OUT, oh2, ow2)
           .transpose(2, 3, 1, 0).reshape(s2 * C2_OUT, FC1_OUT).astype(f32))
    wf1 = jnp.pad(wf1, ((0, NG * G * C2_OUT - s2 * C2_OUT), (0, 0)))
    wf1 = wf1.reshape(NG, G * C2_OUT, FC1_OUT).astype(bf16)
    bf1 = params["fc1_b"].reshape(1, FC1_OUT).astype(f32)

    wf2 = jnp.pad(params["fc2_w"].T.astype(f32),
                  ((0, 0), (0, nap - num_actions))).astype(bf16)   # (256, nap)
    bf2 = jnp.pad(params["fc2_b"].astype(f32),
                  (0, nap - num_actions)).reshape(1, nap)

    return {"w1": w1, "b1": b1, "w2": w2, "b2": b2,
            "wf1": wf1, "bf1": bf1, "wf2": wf2, "bf2": bf2}


# ---------------------------------------------------------------------------
# XLA-side conv1 im2col in parity-plane / batch-minor order (data movement only)
# ---------------------------------------------------------------------------
def _build_conv1_patches(x, tb, oh1, ow1, HP, WPp):
    """Rows ordered (parity plane, plane row, plane col, image-in-tile).

    Un-padded K (= C*25), bf16 transport, raw 0..255 values (the /255 is
    folded into the conv1 weight).
    TODO(synk): move this gather in-kernel (DMA raw uint8 frames) to cut HBM
    input bytes further.
    """
    B, C, H, W = x.shape
    k1 = C * KSIZE * KSIZE
    xf = x.astype(jnp.bfloat16)            # 0..255 exact in bf16
    cols = [xf[:, :, kh:kh + STRIDE * oh1:STRIDE, kw:kw + STRIDE * ow1:STRIDE]
            for kh in range(KSIZE) for kw in range(KSIZE)]          # 25 x (B,C,oh1,ow1)
    pa = jnp.stack(cols, axis=2)                                    # (B, C, 25, oh1, ow1)
    pa = pa.transpose(0, 3, 4, 1, 2).reshape(B, oh1, ow1, k1)       # K order (c, kh, kw)

    planes = []
    for ph in range(2):
        for pw in range(2):
            pln = pa[:, ph::2, pw::2, :]                            # (B, hp, wp, k1)
            pln = jnp.pad(pln, ((0, 0), (0, HP - pln.shape[1]),
                                (0, WPp - pln.shape[2]), (0, 0)))
            planes.append(pln)
    NR = 4 * HP * WPp
    p = jnp.stack(planes, axis=1).reshape(B, NR, k1)                # (B, NR, k1)

    bp = _cdiv(B, tb) * tb
    if bp != B:
        p = jnp.pad(p, ((0, bp - B), (0, 0), (0, 0)))
    # Per tile: (tb, NR) -> (NR, tb): spatial-major, batch-minor rows.
    p = p.reshape(bp // tb, tb, NR, k1).transpose(0, 2, 1, 3)
    return p.reshape(bp * NR, k1), bp


def _vmem_limit_bytes(tb, NR, k1, m2, wf1_shape):
    """Rough per-tile VMEM budget (lane-padded) with headroom, clamped."""
    lp = lambda n: _round_up(n, 128)
    p1_blk = tb * NR * lp(k1) * 2                      # input tile (bf16)
    y1_scr = tb * NR * lp(C1_OUT) * 2                  # y1 scratch (bf16)
    c1_tmp = min(tb * NR, 4096) * lp(C1_OUT) * 6       # conv1 chunk temporaries
    c2_tmp = m2 * lp(C2_OUT) * 14                      # acc2 / tap-dot / y2 temporaries
    wts = (k1 * lp(C1_OUT) + 25 * C1_OUT * lp(C2_OUT)
           + wf1_shape[0] * wf1_shape[1] * lp(FC1_OUT)
           + FC1_OUT * lp(128)) * 2
    est = 2 * p1_blk + y1_scr + c1_tmp + c2_tmp + wts + (2 << 20)
    return int(min(100 << 20, max(32 << 20, (est * 3) // 2)))


# ---------------------------------------------------------------------------
# Forward pass
# ---------------------------------------------------------------------------
def dqn_forward(kp, x_nchw, num_actions, tile_b=16):
    """x_nchw: (B, C, H, W) uint8 frames -> (B, num_actions) f32 Q-values."""
    B, C, H, W = x_nchw.shape
    oh1, ow1 = _conv_out_hw(H, W)
    oh2, ow2 = _conv_out_hw(oh1, ow1)
    HP, WP = oh2 + 2, ow2 + 2
    # Pad plane width so rows-per-image (4*HP*WPp) is a multiple of 16
    # (bf16 sublane pack) -> all slices stay sublane-aligned.
    WPp = WP
    while (4 * HP * WPp) % 16:
        WPp += 1
    NR = 4 * HP * WPp
    k1 = C * KSIZE * KSIZE
    nap = kp["wf2"].shape[1]

    tb = min(tile_b, B)
    if B > tb:                       # keep (tb, 128) output blocks sublane-aligned
        tb = max(8, (tb // 8) * 8)

    p1, bp = _build_conv1_patches(x_nchw, tb, oh1, ow1, HP, WPp)
    m2 = oh2 * WPp * tb

    kernel = functools.partial(_dqn_fused_kernel,
                               tb=tb, HP=HP, WPp=WPp, oh2=oh2, ow2=ow2)
    q_pad = pl.pallas_call(
        kernel,
        out_shape=jax.ShapeDtypeStruct((bp, nap), jnp.float32),
        grid=(bp // tb,),
        in_specs=[
            # only batch-tiled stream; everything below is VMEM-resident
            pl.BlockSpec((tb * NR, k1), lambda i: (i, 0)),
            pl.BlockSpec(kp["w1"].shape, lambda i: (0, 0)),
            pl.BlockSpec(kp["b1"].shape, lambda i: (0, 0)),
            pl.BlockSpec(kp["w2"].shape, lambda i: (0, 0, 0)),
            pl.BlockSpec(kp["b2"].shape, lambda i: (0, 0)),
            pl.BlockSpec(kp["wf1"].shape, lambda i: (0, 0, 0)),
            pl.BlockSpec(kp["bf1"].shape, lambda i: (0, 0)),
            pl.BlockSpec(kp["wf2"].shape, lambda i: (0, 0)),
            pl.BlockSpec(kp["bf2"].shape, lambda i: (0, 0)),
        ],
        out_specs=pl.BlockSpec((tb, nap), lambda i: (i, 0)),
        scratch_shapes=[pltpu.VMEM((tb * NR, C1_OUT), jnp.bfloat16)],  # y1 stays in VMEM
        compiler_params=pltpu.CompilerParams(
            dimension_semantics=("parallel",),
            vmem_limit_bytes=_vmem_limit_bytes(tb, NR, k1, m2, kp["wf1"].shape),
        ),
    )(p1, kp["w1"], kp["b1"], kp["w2"], kp["b2"],
      kp["wf1"], kp["bf1"], kp["wf2"], kp["bf2"])

    return q_pad[:B, :num_actions]


# ---------------------------------------------------------------------------
# Plain-JAX reference of the PyTorch forward (for a numeric sanity check)
# ---------------------------------------------------------------------------
def _reference_forward(params, x):
    xf = x.astype(jnp.float32) / 255.0
    y = jax.lax.conv_general_dilated(xf, params["conv1_w"], (STRIDE, STRIDE), "VALID",
                                     dimension_numbers=("NCHW", "OIHW", "NCHW"))
    y = jax.nn.relu(y + params["conv1_b"][None, :, None, None])
    y = jax.lax.conv_general_dilated(y, params["conv2_w"], (STRIDE, STRIDE), "VALID",
                                     dimension_numbers=("NCHW", "OIHW", "NCHW"))
    y = jax.nn.relu(y + params["conv2_b"][None, :, None, None])
    y = y.reshape(y.shape[0], -1)
    y = jax.nn.relu(y @ params["fc1_w"].T + params["fc1_b"])
    return y @ params["fc2_w"].T + params["fc2_b"]


if __name__ == "__main__":
    key = jax.random.PRNGKey(0)
    B, C, H, W = 2, 4, 16, 16
    num_actions = 9

    k_params, k_x = jax.random.split(key)
    params = init_params(k_params, (C, H, W), num_actions)
    kernel_params = prepare_params(params, (C, H, W))       # one-time weight prep
    x = jax.random.randint(k_x, (B, C, H, W), 0, 256,
                           dtype=jnp.int32).astype(jnp.uint8)

    fwd = jax.jit(functools.partial(dqn_forward, num_actions=num_actions))
    q_values = jax.block_until_ready(fwd(kernel_params, x))

    assert q_values.shape == (B, num_actions), q_values.shape
    assert q_values.dtype == jnp.float32

    # Loose tolerance check vs the f32 reference (kernel matmuls run in bf16).
    q_ref = _reference_forward(params, x)
    err = float(jnp.max(jnp.abs(q_values - q_ref)))
    scale = float(jnp.max(jnp.abs(q_ref))) + 1e-6
    assert err <= 0.1 * scale + 1e-2, (err, scale)

    print("KERNEL_OK")
</pallas_src>

<mosaic_0001>
module attributes {stable_mosaic.version = 11 : i64} {
  func.func @_dqn_fused_kernel(%arg0: i32, %arg1: memref<96x100xbf16, #tpu.memory_space<vmem>>, %arg2: memref<100x16xbf16, #tpu.memory_space<vmem>>, %arg3: memref<1x16xf32, #tpu.memory_space<vmem>>, %arg4: memref<25x16x32xbf16, #tpu.memory_space<vmem>>, %arg5: memref<1x32xf32, #tpu.memory_space<vmem>>, %arg6: memref<1x32x256xbf16, #tpu.memory_space<vmem>>, %arg7: memref<1x256xf32, #tpu.memory_space<vmem>>, %arg8: memref<256x128xbf16, #tpu.memory_space<vmem>>, %arg9: memref<1x128xf32, #tpu.memory_space<vmem>>, %arg10: memref<2x128xf32, #tpu.memory_space<vmem>>, %arg11: memref<96x16xbf16, #tpu.memory_space<vmem>>) attributes {dimension_semantics = [#tpu.dimension_semantics<parallel>], iteration_bounds = array<i64: 1>, scalar_prefetch = 0 : i64, scratch_operands = 1 : i64, tpu.core_type = #tpu.core_type<tc>, window_params = [{transform_indices = @transform_0, window_bounds = array<i64: 96, 100>}, {pipeline_mode = #tpu.pipeline_mode<synchronous>, transform_indices = @transform_1, window_bounds = array<i64: 100, 16>}, {pipeline_mode = #tpu.pipeline_mode<synchronous>, transform_indices = @transform_2, window_bounds = array<i64: 1, 16>}, {pipeline_mode = #tpu.pipeline_mode<synchronous>, transform_indices = @transform_3, window_bounds = array<i64: 25, 16, 32>}, {pipeline_mode = #tpu.pipeline_mode<synchronous>, transform_indices = @transform_4, window_bounds = array<i64: 1, 32>}, {pipeline_mode = #tpu.pipeline_mode<synchronous>, transform_indices = @transform_5, window_bounds = array<i64: 1, 32, 256>}, {pipeline_mode = #tpu.pipeline_mode<synchronous>, transform_indices = @transform_6, window_bounds = array<i64: 1, 256>}, {pipeline_mode = #tpu.pipeline_mode<synchronous>, transform_indices = @transform_7, window_bounds = array<i64: 256, 128>}, {pipeline_mode = #tpu.pipeline_mode<synchronous>, transform_indices = @transform_8, window_bounds = array<i64: 1, 128>}, {transform_indices = @transform_9, window_bounds = array<i64: 2, 128>}]} {
    %c0 = arith.constant 0 : index
    %c0_0 = arith.constant 0 : index
    %0 = vector.load %arg1[%c0, %c0_0] : memref<96x100xbf16, #tpu.memory_space<vmem>>, vector<96x100xbf16>
    %c0_1 = arith.constant 0 : index
    %c0_2 = arith.constant 0 : index
    %1 = vector.load %arg2[%c0_1, %c0_2] : memref<100x16xbf16, #tpu.memory_space<vmem>>, vector<100x16xbf16>
    %cst = arith.constant dense<0.000000e+00> : vector<96x16xf32>
    %2 = tpu.matmul %0, %1, %cst {dimension_numbers = #tpu.dot_dimension_numbers<[1], [0], [0], [1], [0, 0, 1, 1], [], []>} : vector<96x100xbf16>, vector<100x16xbf16>, vector<96x16xf32> -> vector<96x16xf32>
    %c0_3 = arith.constant 0 : index
    %c0_4 = arith.constant 0 : index
    %3 = vector.load %arg3[%c0_3, %c0_4] : memref<1x16xf32, #tpu.memory_space<vmem>>, vector<1x16xf32>
    %4 = vector.broadcast %3 : vector<1x16xf32> to vector<96x16xf32>
    %5 = arith.addf %2, %4 : vector<96x16xf32>
    %cst_5 = arith.constant 0.000000e+00 : f32
    %6 = vector.broadcast %cst_5 : f32 to vector<96x16xf32>
    %7 = arith.maximumf %5, %6 : vector<96x16xf32>
    %8 = arith.truncf %7 : vector<96x16xf32> to vector<96x16xbf16>
    %c0_6 = arith.constant 0 : index
    %c0_7 = arith.constant 0 : index
    %9 = vector.load %arg11[%c0_6, %c0_7] : memref<96x16xbf16, #tpu.memory_space<vmem>>, vector<96x16xbf16>
    tpu.vector_store %arg11[%c0_6, %c0_7], %8 {strides = array<i32>} : memref<96x16xbf16, #tpu.memory_space<vmem>>, vector<96x16xbf16>,
    %cst_8 = arith.constant 0.000000e+00 : f32
    %10 = vector.broadcast %cst_8 : f32 to vector<8x32xf32>
    %c0_9 = arith.constant 0 : index
    %c0_10 = arith.constant 0 : index
    %11 = vector.load %arg11[%c0_9, %c0_10] : memref<96x16xbf16, #tpu.memory_space<vmem>>, vector<8x16xbf16>
    %c0_11 = arith.constant 0 : index
    %c0_12 = arith.constant 0 : index
    %c0_13 = arith.constant 0 : index
    %12 = vector.load %arg4[%c0_11, %c0_12, %c0_13] : memref<25x16x32xbf16, #tpu.memory_space<vmem>>, vector<1x16x32xbf16>
    %13 = vector.shape_cast %12 : vector<1x16x32xbf16> to vector<16x32xbf16>
    %cst_14 = arith.constant dense<0.000000e+00> : vector<8x32xf32>
    %14 = tpu.matmul %11, %13, %cst_14 {dimension_numbers = #tpu.dot_dimension_numbers<[1], [0], [0], [1], [0, 0, 1, 1], [], []>} : vector<8x16xbf16>, vector<16x32xbf16>, vector<8x32xf32> -> vector<8x32xf32>
    %15 = arith.addf %10, %14 : vector<8x32xf32>
    %c24 = arith.constant 24 : index
    %c0_15 = arith.constant 0 : index
    %16 = vector.load %arg11[%c24, %c0_15] : memref<96x16xbf16, #tpu.memory_space<vmem>>, vector<8x16xbf16>
    %c1 = arith.constant 1 : index
    %c0_16 = arith.constant 0 : index
    %c0_17 = arith.constant 0 : index
    %17 = vector.load %arg4[%c1, %c0_16, %c0_17] : memref<25x16x32xbf16, #tpu.memory_space<vmem>>, vector<1x16x32xbf16>
    %18 = vector.shape_cast %17 : vector<1x16x32xbf16> to vector<16x32xbf16>
    %cst_18 = arith.constant dense<0.000000e+00> : vector<8x32xf32>
    %19 = tpu.matmul %16, %18, %cst_18 {dimension_numbers = #tpu.dot_dimension_numbers<[1], [0], [0], [1], [0, 0, 1, 1], [], []>} : vector<8x16xbf16>, vector<16x32xbf16>, vector<8x32xf32> -> vector<8x32xf32>
    %20 = arith.addf %15, %19 : vector<8x32xf32>
    %c2 = arith.constant 2 : index
    %c0_19 = arith.constant 0 : index
    %21 = vector.load %arg11[%c2, %c0_19] : memref<96x16xbf16, #tpu.memory_space<vmem>>, vector<8x16xbf16>
    %c2_20 = arith.constant 2 : index
    %c0_21 = arith.constant 0 : index
    %c0_22 = arith.constant 0 : index
    %22 = vector.load %arg4[%c2_20, %c0_21, %c0_22] : memref<25x16x32xbf16, #tpu.memory_space<vmem>>, vector<1x16x32xbf16>
    %23 = vector.shape_cast %22 : vector<1x16x32xbf16> to vector<16x32xbf16>
    %cst_23 = arith.constant dense<0.000000e+00> : vector<8x32xf32>
    %24 = tpu.matmul %21, %23, %cst_23 {dimension_numbers = #tpu.dot_dimension_numbers<[1], [0], [0], [1], [0, 0, 1, 1], [], []>} : vector<8x16xbf16>, vector<16x32xbf16>, vector<8x32xf32> -> vector<8x32xf32>
    %25 = arith.addf %20, %24 : vector<8x32xf32>
    %c26 = arith.constant 26 : index
    %c0_24 = arith.constant 0 : index
    %26 = vector.load %arg11[%c26, %c0_24] : memref<96x16xbf16, #tpu.memory_space<vmem>>, vector<8x16xbf16>
    %c3 = arith.constant 3 : index
    %c0_25 = arith.constant 0 : index
    %c0_26 = arith.constant 0 : index
    %27 = vector.load %arg4[%c3, %c0_25, %c0_26] : memref<25x16x32xbf16, #tpu.memory_space<vmem>>, vector<1x16x32xbf16>
    %28 = vector.shape_cast %27 : vector<1x16x32xbf16> to vector<16x32xbf16>
    %cst_27 = arith.constant dense<0.000000e+00> : vector<8x32xf32>
    %29 = tpu.matmul %26, %28, %cst_27 {dimension_numbers = #tpu.dot_dimension_numbers<[1], [0], [0], [1], [0, 0, 1, 1], [], []>} : vector<8x16xbf16>, vector<16x32xbf16>, vector<8x32xf32> -> vector<8x32xf32>
    %30 = arith.addf %25, %29 : vector<8x32xf32>
    %c4 = arith.constant 4 : index
    %c0_28 = arith.constant 0 : index
    %31 = vector.load %arg11[%c4, %c0_28] : memref<96x16xbf16, #tpu.memory_space<vmem>>, vector<8x16xbf16>
    %c4_29 = arith.constant 4 : index
    %c0_30 = arith.constant 0 : index
    %c0_31 = arith.constant 0 : index
    %32 = vector.load %arg4[%c4_29, %c0_30, %c0_31] : memref<25x16x32xbf16, #tpu.memory_space<vmem>>, vector<1x16x32xbf16>
    %33 = vector.shape_cast %32 : vector<1x16x32xbf16> to vector<16x32xbf16>
    %cst_32 = arith.constant dense<0.000000e+00> : vector<8x32xf32>
    %34 = tpu.matmul %31, %33, %cst_32 {dimension_numbers = #tpu.dot_dimension_numbers<[1], [0], [0], [1], [0, 0, 1, 1], [], []>} : vector<8x16xbf16>, vector<16x32xbf16>, vector<8x32xf32> -> vector<8x32xf32>
    %35 = arith.addf %30, %34 : vector<8x32xf32>
    %c48 = arith.constant 48 : index
    %c0_33 = arith.constant 0 : index
    %36 = vector.load %arg11[%c48, %c0_33] : memref<96x16xbf16, #tpu.memory_space<vmem>>, vector<8x16xbf16>
    %c5 = arith.constant 5 : index
    %c0_34 = arith.constant 0 : index
    %c0_35 = arith.constant 0 : index
    %37 = vector.load %arg4[%c5, %c0_34, %c0_35] : memref<25x16x32xbf16, #tpu.memory_space<vmem>>, vector<1x16x32xbf16>
    %38 = vector.shape_cast %37 : vector<1x16x32xbf16> to vector<16x32xbf16>
    %cst_36 = arith.constant dense<0.000000e+00> : vector<8x32xf32>
    %39 = tpu.matmul %36, %38, %cst_36 {dimension_numbers = #tpu.dot_dimension_numbers<[1], [0], [0], [1], [0, 0, 1, 1], [], []>} : vector<8x16xbf16>, vector<16x32xbf16>, vector<8x32xf32> -> vector<8x32xf32>
    %40 = arith.addf %35, %39 : vector<8x32xf32>
    %c72 = arith.constant 72 : index
    %c0_37 = arith.constant 0 : index
    %41 = vector.load %arg11[%c72, %c0_37] : memref<96x16xbf16, #tpu.memory_space<vmem>>, vector<8x16xbf16>
    %c6 = arith.constant 6 : index
    %c0_38 = arith.constant 0 : index
    %c0_39 = arith.constant 0 : index
    %42 = vector.load %arg4[%c6, %c0_38, %c0_39] : memref<25x16x32xbf16, #tpu.memory_space<vmem>>, vector<1x16x32xbf16>
    %43 = vector.shape_cast %42 : vector<1x16x32xbf16> to vector<16x32xbf16>
    %cst_40 = arith.constant dense<0.000000e+00> : vector<8x32xf32>
    %44 = tpu.matmul %41, %43, %cst_40 {dimension_numbers = #tpu.dot_dimension_numbers<[1], [0], [0], [1], [0, 0, 1, 1], [], []>} : vector<8x16xbf16>, vector<16x32xbf16>, vector<8x32xf32> -> vector<8x32xf32>
    %45 = arith.addf %40, %44 : vector<8x32xf32>
    %c50 = arith.constant 50 : index
    %c0_41 = arith.constant 0 : index
    %46 = vector.load %arg11[%c50, %c0_41] : memref<96x16xbf16, #tpu.memory_space<vmem>>, vector<8x16xbf16>
    %c7 = arith.constant 7 : index
    %c0_42 = arith.constant 0 : index
    %c0_43 = arith.constant 0 : index
    %47 = vector.load %arg4[%c7, %c0_42, %c0_43] : memref<25x16x32xbf16, #tpu.memory_space<vmem>>, vector<1x16x32xbf16>
    %48 = vector.shape_cast %47 : vector<1x16x32xbf16> to vector<16x32xbf16>
    %cst_44 = arith.constant dense<0.000000e+00> : vector<8x32xf32>
    %49 = tpu.matmul %46, %48, %cst_44 {dimension_numbers = #tpu.dot_dimension_numbers<[1], [0], [0], [1], [0, 0, 1, 1], [], []>} : vector<8x16xbf16>, vector<16x32xbf16>, vector<8x32xf32> -> vector<8x32xf32>
    %50 = arith.addf %45, %49 : vector<8x32xf32>
    %c74 = arith.constant 74 : index
    %c0_45 = arith.constant 0 : index
    %51 = vector.load %arg11[%c74, %c0_45] : memref<96x16xbf16, #tpu.memory_space<vmem>>, vector<8x16xbf16>
    %c8 = arith.constant 8 : index
    %c0_46 = arith.constant 0 : index
    %c0_47 = arith.constant 0 : index
    %52 = vector.load %arg4[%c8, %c0_46, %c0_47] : memref<25x16x32xbf16, #tpu.memory_space<vmem>>, vector<1x16x32xbf16>
    %53 = vector.shape_cast %52 : vector<1x16x32xbf16> to vector<16x32xbf16>
    %cst_48 = arith.constant dense<0.000000e+00> : vector<8x32xf32>
    %54 = tpu.matmul %51, %53, %cst_48 {dimension_numbers = #tpu.dot_dimension_numbers<[1], [0], [0], [1], [0, 0, 1, 1], [], []>} : vector<8x16xbf16>, vector<16x32xbf16>, vector<8x32xf32> -> vector<8x32xf32>
    %55 = arith.addf %50, %54 : vector<8x32xf32>
    %c52 = arith.constant 52 : index
    %c0_49 = arith.constant 0 : index
    %56 = vector.load %arg11[%c52, %c0_49] : memref<96x16xbf16, #tpu.memory_space<vmem>>, vector<8x16xbf16>
    %c9 = arith.constant 9 : index
    %c0_50 = arith.constant 0 : index
    %c0_51 = arith.constant 0 : index
    %57 = vector.load %arg4[%c9, %c0_50, %c0_51] : memref<25x16x32xbf16, #tpu.memory_space<vmem>>, vector<1x16x32xbf16>
    %58 = vector.shape_cast %57 : vector<1x16x32xbf16> to vector<16x32xbf16>
    %cst_52 = arith.constant dense<0.000000e+00> : vector<8x32xf32>
    %59 = tpu.matmul %56, %58, %cst_52 {dimension_numbers = #tpu.dot_dimension_numbers<[1], [0], [0], [1], [0, 0, 1, 1], [], []>} : vector<8x16xbf16>, vector<16x32xbf16>, vector<8x32xf32> -> vector<8x32xf32>
    %60 = arith.addf %55, %59 : vector<8x32xf32>
    %c8_53 = arith.constant 8 : index
    %c0_54 = arith.constant 0 : index
    %61 = vector.load %arg11[%c8_53, %c0_54] : memref<96x16xbf16, #tpu.memory_space<vmem>>, vector<8x16xbf16>
    %c10 = arith.constant 10 : index
    %c0_55 = arith.constant 0 : index
    %c0_56 = arith.constant 0 : index
    %62 = vector.load %arg4[%c10, %c0_55, %c0_56] : memref<25x16x32xbf16, #tpu.memory_space<vmem>>, vector<1x16x32xbf16>
    %63 = vector.shape_cast %62 : vector<1x16x32xbf16> to vector<16x32xbf16>
    %cst_57 = arith.constant dense<0.000000e+00> : vector<8x32xf32>
    %64 = tpu.matmul %61, %63, %cst_57 {dimension_numbers = #tpu.dot_dimension_numbers<[1], [0], [0], [1], [0, 0, 1, 1], [], []>} : vector<8x16xbf16>, vector<16x32xbf16>, vector<8x32xf32> -> vector<8x32xf32>
    %65 = arith.addf %60, %64 : vector<8x32xf32>
    %c32 = arith.constant 32 : index
    %c0_58 = arith.constant 0 : index
    %66 = vector.load %arg11[%c32, %c0_58] : memref<96x16xbf16, #tpu.memory_space<vmem>>, vector<8x16xbf16>
    %c11 = arith.constant 11 : index
    %c0_59 = arith.constant 0 : index
    %c0_60 = arith.constant 0 : index
    %67 = vector.load %arg4[%c11, %c0_59, %c0_60] : memref<25x16x32xbf16, #tpu.memory_space<vmem>>, vector<1x16x32xbf16>
    %68 = vector.shape_cast %67 : vector<1x16x32xbf16> to vector<16x32xbf16>
    %cst_61 = arith.constant dense<0.000000e+00> : vector<8x32xf32>
    %69 = tpu.matmul %66, %68, %cst_61 {dimension_numbers = #tpu.dot_dimension_numbers<[1], [0], [0], [1], [0, 0, 1, 1], [], []>} : vector<8x16xbf16>, vector<16x32xbf16>, vector<8x32xf32> -> vector<8x32xf32>
    %70 = arith.addf %65, %69 : vector<8x32xf32>
    %c10_62 = arith.constant 10 : index
    %c0_63 = arith.constant 0 : index
    %71 = vector.load %arg11[%c10_62, %c0_63] : memref<96x16xbf16, #tpu.memory_space<vmem>>, vector<8x16xbf16>
    %c12 = arith.constant 12 : index
    %c0_64 = arith.constant 0 : index
    %c0_65 = arith.constant 0 : index
    %72 = vector.load %arg4[%c12, %c0_64, %c0_65] : memref<25x16x32xbf16, #tpu.memory_space<vmem>>, vector<1x16x32xbf16>
    %73 = vector.shape_cast %72 : vector<1x16x32xbf16> to vector<16x32xbf16>
    %cst_66 = arith.constant dense<0.000000e+00> : vector<8x32xf32>
    %74 = tpu.matmul %71, %73, %cst_66 {dimension_numbers = #tpu.dot_dimension_numbers<[1], [0], [0], [1], [0, 0, 1, 1], [], []>} : vector<8x16xbf16>, vector<16x32xbf16>, vector<8x32xf32> -> vector<8x32xf32>
    %75 = arith.addf %70, %74 : vector<8x32xf32>
    %c34 = arith.constant 34 : index
    %c0_67 = arith.constant 0 : index
    %76 = vector.load %arg11[%c34, %c0_67] : memref<96x16xbf16, #tpu.memory_space<vmem>>, vector<8x16xbf16>
    %c13 = arith.constant 13 : index
    %c0_68 = arith.constant 0 : index
    %c0_69 = arith.constant 0 : index
    %77 = vector.load %arg4[%c13, %c0_68, %c0_69] : memref<25x16x32xbf16, #tpu.memory_space<vmem>>, vector<1x16x32xbf16>
    %78 = vector.shape_cast %77 : vector<1x16x32xbf16> to vector<16x32xbf16>
    %cst_70 = arith.constant dense<0.000000e+00> : vector<8x32xf32>
    %79 = tpu.matmul %76, %78, %cst_70 {dimension_numbers = #tpu.dot_dimension_numbers<[1], [0], [0], [1], [0, 0, 1, 1], [], []>} : vector<8x16xbf16>, vector<16x32xbf16>, vector<8x32xf32> -> vector<8x32xf32>
    %80 = arith.addf %75, %79 : vector<8x32xf32>
    %c12_71 = arith.constant 12 : index
    %c0_72 = arith.constant 0 : index
    %81 = vector.load %arg11[%c12_71, %c0_72] : memref<96x16xbf16, #tpu.memory_space<vmem>>, vector<8x16xbf16>
    %c14 = arith.constant 14 : index
    %c0_73 = arith.constant 0 : index
    %c0_74 = arith.constant 0 : index
    %82 = vector.load %arg4[%c14, %c0_73, %c0_74] : memref<25x16x32xbf16, #tpu.memory_space<vmem>>, vector<1x16x32xbf16>
    %83 = vector.shape_cast %82 : vector<1x16x32xbf16> to vector<16x32xbf16>
    %cst_75 = arith.constant dense<0.000000e+00> : vector<8x32xf32>
    %84 = tpu.matmul %81, %83, %cst_75 {dimension_numbers = #tpu.dot_dimension_numbers<[1], [0], [0], [1], [0, 0, 1, 1], [], []>} : vector<8x16xbf16>, vector<16x32xbf16>, vector<8x32xf32> -> vector<8x32xf32>
    %85 = arith.addf %80, %84 : vector<8x32xf32>
    %c56 = arith.constant 56 : index
    %c0_76 = arith.constant 0 : index
    %86 = vector.load %arg11[%c56, %c0_76] : memref<96x16xbf16, #tpu.memory_space<vmem>>, vector<8x16xbf16>
    %c15 = arith.constant 15 : index
    %c0_77 = arith.constant 0 : index
    %c0_78 = arith.constant 0 : index
    %87 = vector.load %arg4[%c15, %c0_77, %c0_78] : memref<25x16x32xbf16, #tpu.memory_space<vmem>>, vector<1x16x32xbf16>
    %88 = vector.shape_cast %87 : vector<1x16x32xbf16> to vector<16x32xbf16>
    %cst_79 = arith.constant dense<0.000000e+00> : vector<8x32xf32>
    %89 = tpu.matmul %86, %88, %cst_79 {dimension_numbers = #tpu.dot_dimension_numbers<[1], [0], [0], [1], [0, 0, 1, 1], [], []>} : vector<8x16xbf16>, vector<16x32xbf16>, vector<8x32xf32> -> vector<8x32xf32>
    %90 = arith.addf %85, %89 : vector<8x32xf32>
    %c80 = arith.constant 80 : index
    %c0_80 = arith.constant 0 : index
    %91 = vector.load %arg11[%c80, %c0_80] : memref<96x16xbf16, #tpu.memory_space<vmem>>, vector<8x16xbf16>
    %c16 = arith.constant 16 : index
    %c0_81 = arith.constant 0 : index
    %c0_82 = arith.constant 0 : index
    %92 = vector.load %arg4[%c16, %c0_81, %c0_82] : memref<25x16x32xbf16, #tpu.memory_space<vmem>>, vector<1x16x32xbf16>
    %93 = vector.shape_cast %92 : vector<1x16x32xbf16> to vector<16x32xbf16>
    %cst_83 = arith.constant dense<0.000000e+00> : vector<8x32xf32>
    %94 = tpu.matmul %91, %93, %cst_83 {dimension_numbers = #tpu.dot_dimension_numbers<[1], [0], [0], [1], [0, 0, 1, 1], [], []>} : vector<8x16xbf16>, vector<16x32xbf16>, vector<8x32xf32> -> vector<8x32xf32>
    %95 = arith.addf %90, %94 : vector<8x32xf32>
    %c58 = arith.constant 58 : index
    %c0_84 = arith.constant 0 : index
    %96 = vector.load %arg11[%c58, %c0_84] : memref<96x16xbf16, #tpu.memory_space<vmem>>, vector<8x16xbf16>
    %c17 = arith.constant 17 : index
    %c0_85 = arith.constant 0 : index
    %c0_86 = arith.constant 0 : index
    %97 = vector.load %arg4[%c17, %c0_85, %c0_86] : memref<25x16x32xbf16, #tpu.memory_space<vmem>>, vector<1x16x32xbf16>
    %98 = vector.shape_cast %97 : vector<1x16x32xbf16> to vector<16x32xbf16>
    %cst_87 = arith.constant dense<0.000000e+00> : vector<8x32xf32>
    %99 = tpu.matmul %96, %98, %cst_87 {dimension_numbers = #tpu.dot_dimension_numbers<[1], [0], [0], [1], [0, 0, 1, 1], [], []>} : vector<8x16xbf16>, vector<16x32xbf16>, vector<8x32xf32> -> vector<8x32xf32>
    %100 = arith.addf %95, %99 : vector<8x32xf32>
    %c82 = arith.constant 82 : index
    %c0_88 = arith.constant 0 : index
    %101 = vector.load %arg11[%c82, %c0_88] : memref<96x16xbf16, #tpu.memory_space<vmem>>, vector<8x16xbf16>
    %c18 = arith.constant 18 : index
    %c0_89 = arith.constant 0 : index
    %c0_90 = arith.constant 0 : index
    %102 = vector.load %arg4[%c18, %c0_89, %c0_90] : memref<25x16x32xbf16, #tpu.memory_space<vmem>>, vector<1x16x32xbf16>
    %103 = vector.shape_cast %102 : vector<1x16x32xbf16> to vector<16x32xbf16>
    %cst_91 = arith.constant dense<0.000000e+00> : vector<8x32xf32>
    %104 = tpu.matmul %101, %103, %cst_91 {dimension_numbers = #tpu.dot_dimension_numbers<[1], [0], [0], [1], [0, 0, 1, 1], [], []>} : vector<8x16xbf16>, vector<16x32xbf16>, vector<8x32xf32> -> vector<8x32xf32>
    %105 = arith.addf %100, %104 : vector<8x32xf32>
    %c60 = arith.constant 60 : index
    %c0_92 = arith.constant 0 : index
    %106 = vector.load %arg11[%c60, %c0_92] : memref<96x16xbf16, #tpu.memory_space<vmem>>, vector<8x16xbf16>
    %c19 = arith.constant 19 : index
    %c0_93 = arith.constant 0 : index
    %c0_94 = arith.constant 0 : index
    %107 = vector.load %arg4[%c19, %c0_93, %c0_94] : memref<25x16x32xbf16, #tpu.memory_space<vmem>>, vector<1x16x32xbf16>
    %108 = vector.shape_cast %107 : vector<1x16x32xbf16> to vector<16x32xbf16>
    %cst_95 = arith.constant dense<0.000000e+00> : vector<8x32xf32>
    %109 = tpu.matmul %106, %108, %cst_95 {dimension_numbers = #tpu.dot_dimension_numbers<[1], [0], [0], [1], [0, 0, 1, 1], [], []>} : vector<8x16xbf16>, vector<16x32xbf16>, vector<8x32xf32> -> vector<8x32xf32>
    %110 = arith.addf %105, %109 : vector<8x32xf32>
    %c16_96 = arith.constant 16 : index
    %c0_97 = arith.constant 0 : index
    %111 = vector.load %arg11[%c16_96, %c0_97] : memref<96x16xbf16, #tpu.memory_space<vmem>>, vector<8x16xbf16>
    %c20 = arith.constant 20 : index
    %c0_98 = arith.constant 0 : index
    %c0_99 = arith.constant 0 : index
    %112 = vector.load %arg4[%c20, %c0_98, %c0_99] : memref<25x16x32xbf16, #tpu.memory_space<vmem>>, vector<1x16x32xbf16>
    %113 = vector.shape_cast %112 : vector<1x16x32xbf16> to vector<16x32xbf16>
    %cst_100 = arith.constant dense<0.000000e+00> : vector<8x32xf32>
    %114 = tpu.matmul %111, %113, %cst_100 {dimension_numbers = #tpu.dot_dimension_numbers<[1], [0], [0], [1], [0, 0, 1, 1], [], []>} : vector<8x16xbf16>, vector<16x32xbf16>, vector<8x32xf32> -> vector<8x32xf32>
    %115 = arith.addf %110, %114 : vector<8x32xf32>
    %c40 = arith.constant 40 : index
    %c0_101 = arith.constant 0 : index
    %116 = vector.load %arg11[%c40, %c0_101] : memref<96x16xbf16, #tpu.memory_space<vmem>>, vector<8x16xbf16>
    %c21 = arith.constant 21 : index
    %c0_102 = arith.constant 0 : index
    %c0_103 = arith.constant 0 : index
    %117 = vector.load %arg4[%c21, %c0_102, %c0_103] : memref<25x16x32xbf16, #tpu.memory_space<vmem>>, vector<1x16x32xbf16>
    %118 = vector.shape_cast %117 : vector<1x16x32xbf16> to vector<16x32xbf16>
    %cst_104 = arith.constant dense<0.000000e+00> : vector<8x32xf32>
    %119 = tpu.matmul %116, %118, %cst_104 {dimension_numbers = #tpu.dot_dimension_numbers<[1], [0], [0], [1], [0, 0, 1, 1], [], []>} : vector<8x16xbf16>, vector<16x32xbf16>, vector<8x32xf32> -> vector<8x32xf32>
    %120 = arith.addf %115, %119 : vector<8x32xf32>
    %c18_105 = arith.constant 18 : index
    %c0_106 = arith.constant 0 : index
    %121 = vector.load %arg11[%c18_105, %c0_106] : memref<96x16xbf16, #tpu.memory_space<vmem>>, vector<8x16xbf16>
    %c22 = arith.constant 22 : index
    %c0_107 = arith.constant 0 : index
    %c0_108 = arith.constant 0 : index
    %122 = vector.load %arg4[%c22, %c0_107, %c0_108] : memref<25x16x32xbf16, #tpu.memory_space<vmem>>, vector<1x16x32xbf16>
    %123 = vector.shape_cast %122 : vector<1x16x32xbf16> to vector<16x32xbf16>
    %cst_109 = arith.constant dense<0.000000e+00> : vector<8x32xf32>
    %124 = tpu.matmul %121, %123, %cst_109 {dimension_numbers = #tpu.dot_dimension_numbers<[1], [0], [0], [1], [0, 0, 1, 1], [], []>} : vector<8x16xbf16>, vector<16x32xbf16>, vector<8x32xf32> -> vector<8x32xf32>
    %125 = arith.addf %120, %124 : vector<8x32xf32>
    %c42 = arith.constant 42 : index
    %c0_110 = arith.constant 0 : index
    %126 = vector.load %arg11[%c42, %c0_110] : memref<96x16xbf16, #tpu.memory_space<vmem>>, vector<8x16xbf16>
    %c23 = arith.constant 23 : index
    %c0_111 = arith.constant 0 : index
    %c0_112 = arith.constant 0 : index
    %127 = vector.load %arg4[%c23, %c0_111, %c0_112] : memref<25x16x32xbf16, #tpu.memory_space<vmem>>, vector<1x16x32xbf16>
    %128 = vector.shape_cast %127 : vector<1x16x32xbf16> to vector<16x32xbf16>
    %cst_113 = arith.constant dense<0.000000e+00> : vector<8x32xf32>
    %129 = tpu.matmul %126, %128, %cst_113 {dimension_numbers = #tpu.dot_dimension_numbers<[1], [0], [0], [1], [0, 0, 1, 1], [], []>} : vector<8x16xbf16>, vector<16x32xbf16>, vector<8x32xf32> -> vector<8x32xf32>
    %130 = arith.addf %125, %129 : vector<8x32xf32>
    %c20_114 = arith.constant 20 : index
    %c0_115 = arith.constant 0 : index
    %131 = vector.load %arg11[%c20_114, %c0_115] : memref<96x16xbf16, #tpu.memory_space<vmem>>, vector<8x16xbf16>
    %c24_116 = arith.constant 24 : index
    %c0_117 = arith.constant 0 : index
    %c0_118 = arith.constant 0 : index
    %132 = vector.load %arg4[%c24_116, %c0_117, %c0_118] : memref<25x16x32xbf16, #tpu.memory_space<vmem>>, vector<1x16x32xbf16>
    %133 = vector.shape_cast %132 : vector<1x16x32xbf16> to vector<16x32xbf16>
    %cst_119 = arith.constant dense<0.000000e+00> : vector<8x32xf32>
    %134 = tpu.matmul %131, %133, %cst_119 {dimension_numbers = #tpu.dot_dimension_numbers<[1], [0], [0], [1], [0, 0, 1, 1], [], []>} : vector<8x16xbf16>, vector<16x32xbf16>, vector<8x32xf32> -> vector<8x32xf32>
    %135 = arith.addf %130, %134 : vector<8x32xf32>
    %c0_120 = arith.constant 0 : index
    %c0_121 = arith.constant 0 : index
    %136 = vector.load %arg5[%c0_120, %c0_121] : memref<1x32xf32, #tpu.memory_space<vmem>>, vector<1x32xf32>
    %137 = vector.broadcast %136 : vector<1x32xf32> to vector<8x32xf32>
    %138 = arith.addf %135, %137 : vector<8x32xf32>
    %cst_122 = arith.constant 0.000000e+00 : f32
    %139 = vector.broadcast %cst_122 : f32 to vector<8x32xf32>
    %140 = arith.maximumf %138, %139 : vector<8x32xf32>
    %141 = arith.truncf %140 : vector<8x32xf32> to vector<8x32xbf16>
    %cst_123 = arith.constant 0.000000e+00 : f32
    %142 = vector.broadcast %cst_123 : f32 to vector<2x256xf32>
    %143 = vector.extract_strided_slice %141 {offsets = [0, 0], sizes = [2, 32], strides = [1, 1]} : vector<8x32xbf16> to vector<2x32xbf16>
    %c0_124 = arith.constant 0 : index
    %c0_125 = arith.constant 0 : index
    %c0_126 = arith.constant 0 : index
    %144 = vector.load %arg6[%c0_124, %c0_125, %c0_126] : memref<1x32x256xbf16, #tpu.memory_space<vmem>>, vector<1x32x256xbf16>
    %145 = vector.shape_cast %144 : vector<1x32x256xbf16> to vector<32x256xbf16>
    %cst_127 = arith.constant dense<0.000000e+00> : vector<2x256xf32>
    %146 = tpu.matmul %143, %145, %cst_127 {dimension_numbers = #tpu.dot_dimension_numbers<[1], [0], [0], [1], [0, 0, 1, 1], [], []>} : vector<2x32xbf16>, vector<32x256xbf16>, vector<2x256xf32> -> vector<2x256xf32>
    %147 = arith.addf %142, %146 : vector<2x256xf32>
    %c0_128 = arith.constant 0 : index
    %c0_129 = arith.constant 0 : index
    %148 = vector.load %arg7[%c0_128, %c0_129] : memref<1x256xf32, #tpu.memory_space<vmem>>, vector<1x256xf32>
    %149 = vector.broadcast %148 : vector<1x256xf32> to vector<2x256xf32>
    %150 = arith.addf %147, %149 : vector<2x256xf32>
    %cst_130 = arith.constant 0.000000e+00 : f32
    %151 = vector.broadcast %cst_130 : f32 to vector<2x256xf32>
    %152 = arith.maximumf %150, %151 : vector<2x256xf32>
    %153 = arith.truncf %152 : vector<2x256xf32> to vector<2x256xbf16>
    %c0_131 = arith.constant 0 : index
    %c0_132 = arith.constant 0 : index
    %154 = vector.load %arg8[%c0_131, %c0_132] : memref<256x128xbf16, #tpu.memory_space<vmem>>, vector<256x128xbf16>
    %cst_133 = arith.constant dense<0.000000e+00> : vector<2x128xf32>
    %155 = tpu.matmul %153, %154, %cst_133 {dimension_numbers = #tpu.dot_dimension_numbers<[1], [0], [0], [1], [0, 0, 1, 1], [], []>} : vector<2x256xbf16>, vector<256x128xbf16>, vector<2x128xf32> -> vector<2x128xf32>
    %c0_134 = arith.constant 0 : index
    %c0_135 = arith.constant 0 : index
    %156 = vector.load %arg9[%c0_134, %c0_135] : memref<1x128xf32, #tpu.memory_space<vmem>>, vector<1x128xf32>
    %157 = vector.broadcast %156 : vector<1x128xf32> to vector<2x128xf32>
    %158 = arith.addf %155, %157 : vector<2x128xf32>
    %c0_136 = arith.constant 0 : index
    %c0_137 = arith.constant 0 : index
    %159 = vector.load %arg10[%c0_136, %c0_137] : memref<2x128xf32, #tpu.memory_space<vmem>>, vector<2x128xf32>
    tpu.vector_store %arg10[%c0_136, %c0_137], %158 {strides = array<i32>} : memref<2x128xf32, #tpu.memory_space<vmem>>, vector<2x128xf32>,
    return
  }
  func.func @transform_0(%arg0: i32) -> (i32, i32) {
    %c0_i32 = arith.constant 0 : i32
    %c0_i32_0 = arith.constant 0 : i32
    return %arg0, %c0_i32 : i32, i32
  }
  func.func @transform_1(%arg0: i32) -> (i32, i32) {
    %c0_i32 = arith.constant 0 : i32
    %c0_i32_0 = arith.constant 0 : i32
    %c0_i32_1 = arith.constant 0 : i32
    return %c0_i32, %c0_i32_0 : i32, i32
  }
  func.func @transform_2(%arg0: i32) -> (i32, i32) {
    %c0_i32 = arith.constant 0 : i32
    %c0_i32_0 = arith.constant 0 : i32
    %c0_i32_1 = arith.constant 0 : i32
    return %c0_i32, %c0_i32_0 : i32, i32
  }
  func.func @transform_3(%arg0: i32) -> (i32, i32, i32) {
    %c0_i32 = arith.constant 0 : i32
    %c0_i32_0 = arith.constant 0 : i32
    %c0_i32_1 = arith.constant 0 : i32
    %c0_i32_2 = arith.constant 0 : i32
    return %c0_i32, %c0_i32_0, %c0_i32_1 : i32, i32, i32
  }
  func.func @transform_4(%arg0: i32) -> (i32, i32) {
    %c0_i32 = arith.constant 0 : i32
    %c0_i32_0 = arith.constant 0 : i32
    %c0_i32_1 = arith.constant 0 : i32
    return %c0_i32, %c0_i32_0 : i32, i32
  }
  func.func @transform_5(%arg0: i32) -> (i32, i32, i32) {
    %c0_i32 = arith.constant 0 : i32
    %c0_i32_0 = arith.constant 0 : i32
    %c0_i32_1 = arith.constant 0 : i32
    %c0_i32_2 = arith.constant 0 : i32
    return %c0_i32, %c0_i32_0, %c0_i32_1 : i32, i32, i32
  }
  func.func @transform_6(%arg0: i32) -> (i32, i32) {
    %c0_i32 = arith.constant 0 : i32
    %c0_i32_0 = arith.constant 0 : i32
    %c0_i32_1 = arith.constant 0 : i32
    return %c0_i32, %c0_i32_0 : i32, i32
  }
  func.func @transform_7(%arg0: i32) -> (i32, i32) {
    %c0_i32 = arith.constant 0 : i32
    %c0_i32_0 = arith.constant 0 : i32
    %c0_i32_1 = arith.constant 0 : i32
    return %c0_i32, %c0_i32_0 : i32, i32
  }
  func.func @transform_8(%arg0: i32) -> (i32, i32) {
    %c0_i32 = arith.constant 0 : i32
    %c0_i32_0 = arith.constant 0 : i32
    %c0_i32_1 = arith.constant 0 : i32
    return %c0_i32, %c0_i32_0 : i32, i32
  }
  func.func @transform_9(%arg0: i32) -> (i32, i32) {
    %c0_i32 = arith.constant 0 : i32
    %c0_i32_0 = arith.constant 0 : i32
    return %arg0, %c0_i32 : i32, i32
  }
}

</mosaic_0001>

<bundles_post_ra>
// kernel: dqn_forward.1
= control target key start
LH: loop header
LB: loop body
LE: loop exit
PB: predicated region body
PF: predicated region fallthrough
CT: control target
= control target key end

     0   :  { %vm151_vm0 = vcmask 1041408   ;;  %s2029_s0 = inlined_call_operand.vmem [shape: bf16[96,100], index: 0, kind: input, shape index: {}]   ;;  %s2030_s1 = inlined_call_operand.vmem [shape: bf16[100,16], index: 1, kind: input, shape index: {}]   ;;  %s2031_s2 = inlined_call_operand.vmem [shape: f32[1,16], index: 2, kind: input, shape index: {}]   ;;  %s2032_s3 = inlined_call_operand.vmem [shape: bf16[25,16,32], index: 3, kind: input, shape index: {}]   ;;  %s2033_s4 = inlined_call_operand.vmem [shape: f32[1,32], index: 4, kind: input, shape index: {}]   ;;  %s2034_s5 = inlined_call_operand.vmem [shape: bf16[1,32,256], index: 5, kind: input, shape index: {}]   ;;  %s2035_s6 = inlined_call_operand.vmem [shape: f32[1,256], index: 6, kind: input, shape index: {}]   ;;  %s2036_s7 = inlined_call_operand.vmem [shape: bf16[256,128], index: 7, kind: input, shape index: {}]   ;;  %s2037_s8 = inlined_call_operand.vmem [shape: f32[1,128], index: 8, kind: input, shape index: {}]   ;;  %s2038_s9 = inlined_call_operand.hbm [shape: f32[2,128], index: 9, kind: output, shape index: {}]  }
   0x1   :  { %v58_v0 = vld [vmem:[%s2030_s1 + $0x30] sm:$0x3] }
   0x2   :  { %v118_v1 = vunpack.c.l.b16 %v58_v0 }
   0x4   :  { %v125_v2 = vpack.c.b16 %v118_v1, %v118_v1 }
   0x5   :  { %14 = vsyncpa [#allocation4], 0  ;;  %v1635_v4 = vld [vmem:[%s2030_s1 + $0x28] sm:$0xff]  ;;  %v1634_v5 = vld [vmem:[%s2030_s1 + $0x20] sm:$0xff]  ;;  %vm132_vm1 = vcmask 818176   ;;  %vm218_vm2 = vcmask 125952  }
   0x6   :  { %v153_v3 = vsel %vm151_vm0, %v125_v2, 0  ;;  %v1633_v6 = vld [vmem:[%s2030_s1 + $0x18] sm:$0xff]  ;;  %v1632_v7 = vld [vmem:[%s2030_s1 + $0x10] sm:$0xff]  ;;  %v1631_v8 = vld [vmem:[%s2030_s1 + $0x8] sm:$0xff]  ;;  %vm244_vm3 = vcmask 130048   ;;  %vm1046_vm4 = vcmask 261120  }
   0x7   :  { %156 = vmatpush.bf16.msra.mxu0 %v153_v3  ;;  %v1630_v9 = vld [vmem:[%s2030_s1] sm:$0xff]  ;;  %v1625_v11 = vld [vmem:[%s2029_s0 + $0x8] sm:$0xff]  ;;  %v1626_v12 = vld [vmem:[%s2029_s0 + $0x10] sm:$0xff]  ;;  %s1246_s19 = sshll.u32 %s2038_s9, 4  ;;  %s1247_s19 = int_to_ptr.hbm [resolvable:$true] %s1246_s19 }
   0x8   :  { %v1624_v10 = vld [vmem:[%s2029_s0] sm:$0xff]  ;;  %v1627_v13 = vld [vmem:[%s2029_s0 + $0x18] sm:$0xff]  ;;  %v1629_v15 = vld [vmem:[%s2029_s0 + $0x28] sm:$0xff] }
   0x9   :  { %v1628_v14 = vld [vmem:[%s2029_s0 + $0x20] sm:$0xff]  ;;  %v1639_v17 = vld [vmem:[%s2032_s3 + $0x10] sm:$0xff]  ;;  %v1637_v22 = vld [vmem:[%s2032_s3 + $0x8] sm:$0xff] }
   0xa   :  { %v1636_v16 = vld [vmem:[%s2032_s3] sm:$0xff]  ;;  %310 = vmatpush.bf16.msra.mxu3 %v1639_v17  ;;  %255 = vmatpush.bf16.msra.mxu1 %v1637_v22  ;;  %v1641_v32 = vld [vmem:[%s2032_s3 + $0x18] sm:$0xff]  ;;  %v1644_v44 = vld [vmem:[%s2032_s3 + $0x28] sm:$0xff] }
   0xb   :  { %157 = vmatpush.bf16.msra.mxu0 %v1635_v4  ;;  %277 = vmatpush.bf16.msra.mxu2 %v1636_v16  ;;  %v1643_v18 = vld [vmem:[%s2032_s3 + $0x20] sm:$0xff]  ;;  %v1647_v53 = vld [vmem:[%s2032_s3 + $0x38] sm:$0xff]  ;;  %v1645_v59 = vld [vmem:[%s2032_s3 + $0x30] sm:$0xff] }
   0xc   :  { %v1828_v19 = vld [vmem:[%s2031_s2] ss:$0 sm:$0xff]  ;;  %v1652_v3 = vld [vmem:[%s2032_s3 + $0x50] sm:$0xff] }
   0xd   :  { %v1649_v4 = vld [vmem:[%s2032_s3 + $0x40] sm:$0xff] }
   0xe   :  { %344 = vmatpush.bf16.msrb.mxu1 %v1641_v32  ;;  %405 = vmatpush.bf16.msrb.mxu3 %v1644_v44 }
   0xf   :  { %158 = vmatpush.bf16.msra.mxu0 %v1634_v5  ;;  %378 = vmatpush.bf16.msrb.mxu2 %v1643_v18 }
  0x13   :  { %159 = vmatpush.bf16.msra.mxu0 %v1633_v6 }
  0x17   :  { %160 = vmatpush.bf16.msra.mxu0 %v1632_v7 }
  0x1b   :  { %161 = vmatpush.bf16.msra.mxu0 %v1631_v8 }
  0x1f   :  { %162 = vmatpush.bf16.msra.mxu0 %v1630_v9 }
  0x22   :  { %1303 = vmatmul.msk.bf16.vlgmr.msra.gmra.mxu0 %vm132_vm1, %v1624_v10  ;;  %v1651_v10 = vld [vmem:[%s2032_s3 + $0x48] sm:$0xff] }
  0x32   :  { %1304 = vmatmul.msk.bf16.gmra.mxu0 %vm132_vm1, %v1625_v11 }
  0x42   :  { %1305 = vmatmul.msk.bf16.gmra.mxu0 %vm132_vm1, %v1626_v12 }
  0x52   :  { %1306 = vmatmul.msk.bf16.gmra.mxu0 %vm132_vm1, %v1627_v13 }
  0x62   :  { %1307 = vmatmul.msk.bf16.gmra.mxu0 %vm132_vm1, %v1628_v14  ;;  %v1653_v14 = vld [vmem:[%s2032_s3 + $0x58] sm:$0xff] }
  0x72   :  { %1308 = vmatmul.msk.bf16.gmra.mxu0 %vm132_vm1, %v1629_v15 }
  0x9f   :  { %v164_v20 = vpop.f32.mrf.mxu0 }
  0xa0   :  { %v165_v21 = vadd.f32 %v1828_v19, %v164_v20 }
  0xa2   :  { %v194_v23 = vmax.f32 %v165_v21, 0.0  ;;  %v1657_v21 = vld [vmem:[%s2032_s3 + $0x68] sm:$0xff] }
  0xa4   :  { %v206_v24 = vpack.c.bf16 %v194_v23, %v194_v23 }
  0xa6   :  { %219 = vst.msk [vmem:[#allocation2] sm:$0xf] %vm218_vm2, %v206_v24 }
  0xa7   :  { %v166_v25 = vpop.f32.mrf.mxu0 }
  0xa8   :  { %v167_v26 = vadd.f32 %v1828_v19, %v166_v25 }
  0xaa   :  { %v195_v27 = vmax.f32 %v167_v26, 0.0 }
  0xac   :  { %v207_v28 = vpack.c.bf16 %v195_v27, %v195_v27 }
  0xad   :  { %v231_v29 = vld [vmem:[#allocation2] sm:$0xf] }
  0xae   :  { %220 = vst.msk [vmem:[#allocation2 + $0x4] sm:$0xf] %vm218_vm2, %v207_v28  ;;  %1320 = vmatmul.msk.bf16.vlgmr.msra.gmra.mxu2 %vm244_vm3, %v231_v29  ;;  %v1325_v35 = vld [vmem:[#allocation2] sm:$0xe] }
  0xaf   :  { %v169_v30 = vpop.f32.mrf.mxu0  ;;  %v1347_v40 = vld [vmem:[#allocation2] sm:$0xc]  ;;  %466 = vmatpush.bf16.msra.mxu2 %v1647_v53 }
  0xb0   :  { %v170_v31 = vadd.f32 %v1828_v19, %v169_v30  ;;  %v1655_v29 = vld [vmem:[%s2032_s3 + $0x60] sm:$0xff] }
  0xb2   :  { %v196_v33 = vmax.f32 %v170_v31, 0.0 }
  0xb4   :  { %v208_v34 = vpack.c.bf16 %v196_v33, %v196_v33  ;;  %v1661_v33 = vld [vmem:[%s2032_s3 + $0x80] sm:$0xff] }
  0xb5   :  { %v1638_v36 = vld [vmem:[#allocation2] sm:$0x10]  ;;  %v1419_v53 = vld [vmem:[#allocation2 + $0x4] sm:$0xe] }
  0xb6   :  { %v1642_v37 = vld [vmem:[#allocation2] sm:$0x30]  ;;  %221 = vst.msk [vmem:[#allocation2 + $0x8] sm:$0xf] %vm218_vm2, %v208_v34  ;;  %v1326_v38 = vor.u32 %v1638_v36, %v1325_v35 }
  0xb7   :  { %v171_v39 = vpop.f32.mrf.mxu0  ;;  %v1348_v43 = vor.u32 %v1642_v37, %v1347_v40  ;;  %v541_v35 = vld [vmem:[#allocation2 + $0x4] sm:$0xf] }
  0xb8   :  { %v172_v41 = vadd.f32 %v1828_v19, %v171_v39  ;;  %v293_v42 = vrot.slane %v1326_v38, 1 }
  0xb9   :  { %v361_v47 = vrot.slane %v1348_v43, 2  ;;  %v1659_v43 = vld [vmem:[%s2032_s3 + $0x70] sm:$0xff] }
  0xba   :  { %v197_v45 = vmax.f32 %v172_v41, 0.0  ;;  %1331 = vmatmul.msk.bf16.vlgmr.msra.gmra.mxu3 %vm244_vm3, %v293_v42 }
  0xbb   :  { %500 = vmatpush.bf16.msra.mxu3 %v1649_v4  ;;  %v1669_v4 = vld [vmem:[%s2032_s3 + $0xa8] sm:$0xff] }
  0xbc   :  { %v209_v46 = vpack.c.bf16 %v197_v45, %v197_v45 }
  0xbe   :  { %222 = vst.msk [vmem:[#allocation2 + $0xc] sm:$0xf] %vm218_vm2, %v209_v46  ;;  %1353 = vmatmul.msk.bf16.vlgmr.msrb.gmra.mxu2 %vm244_vm3, %v361_v47  ;;  %v1660_v47 = vld [vmem:[%s2032_s3 + $0x78] sm:$0xff] }
  0xbf   :  { %v174_v48 = vpop.f32.mrf.mxu0  ;;  %561 = vmatpush.bf16.msrb.mxu2 %v1652_v3 }
  0xc0   :  { %v175_v49 = vadd.f32 %v1828_v19, %v174_v48 }
  0xc2   :  { %v198_v50 = vmax.f32 %v175_v49, 0.0 }
  0xc4   :  { %v210_v51 = vpack.c.bf16 %v198_v50, %v198_v50  ;;  %v1667_v50 = vld [vmem:[%s2032_s3 + $0x98] sm:$0xff] }
  0xc5   :  { %v234_v52 = vld [vmem:[#allocation2 + $0xc] sm:$0xf] }
  0xc6   :  { %223 = vst.msk [vmem:[#allocation2 + $0x10] sm:$0xf] %vm218_vm2, %v210_v51  ;;  %1315 = vmatmul.msk.bf16.vlgmr.msra.gmra.mxu1 %vm244_vm3, %v234_v52  ;;  %v1336_v61 = vld [vmem:[#allocation2 + $0xc] sm:$0xe]  ;;  %v1654_v52 = vld [vmem:[#allocation2 + $0x4] sm:$0x10] }
  0xc7   :  { %v176_v54 = vpop.f32.mrf.mxu0  ;;  %432 = vmatpush.bf16.msra.mxu1 %v1645_v59  ;;  %v1671_v59 = vld [vmem:[%s2032_s3 + $0xb0] sm:$0xff] }
  0xc8   :  { %v177_v55 = vadd.f32 %v1828_v19, %v176_v54  ;;  %v1663_v54 = vld [vmem:[%s2032_s3 + $0x88] sm:$0xff] }
  0xca   :  { %v199_v56 = vmax.f32 %v177_v55, 0.0  ;;  %v1420_v55 = vor.u32 %v1654_v52, %v1419_v53 }
  0xcc   :  { %v211_v57 = vpack.c.bf16 %v199_v56, %v199_v56 }
  0xcd   :  { %v1640_v58 = vld [vmem:[#allocation2 + $0xc] sm:$0x10]  ;;  %v1430_v46 = vld [vmem:[#allocation2 + $0x10] sm:$0xe] }
  0xce   :  { %224 = vst.msk [vmem:[#allocation2 + $0x14] sm:$0xf] %vm218_vm2, %v211_v57  ;;  %v1337_v63 = vor.u32 %v1640_v58, %v1336_v61  ;;  %v568_v56 = vld [vmem:[#allocation2 + $0x10] sm:$0xf]  ;;  %v605_v58 = vrot.slane %v1420_v55, 1 }
  0xcf   :  { %v179_v60 = vpop.f32.mrf.mxu0  ;;  %v1665_v57 = vld [vmem:[%s2032_s3 + $0x90] sm:$0xff]  ;;  %v1658_v61 = vld [vmem:[#allocation2 + $0x4] sm:$0x30] }
  0xd0   :  { %v180_v62 = vadd.f32 %v1828_v19, %v179_v60  ;;  %v327_v2 = vrot.slane %v1337_v63, 1 }
  0xd2   :  { %v200_v0 = vmax.f32 %v180_v62, 0.0  ;;  %v1441_v62 = vld [vmem:[#allocation2 + $0x4] sm:$0xc] }
  0xd3   :  { %v1442_v63 = vor.u32 %v1658_v61, %v1441_v62 }
  0xd4   :  { %v212_v1 = vpack.c.bf16 %v200_v0, %v200_v0  ;;  %v1668_v0 = vld [vmem:[%s2032_s3 + $0xa0] sm:$0xff] }
  0xd6   :  { %225 = vst.msk [vmem:[#allocation2 + $0x18] sm:$0xf] %vm218_vm2, %v212_v1  ;;  %1342 = vmatmul.msk.bf16.vlgmr.msrb.gmra.mxu1 %vm244_vm3, %v327_v2  ;;  %v673_v1 = vrot.slane %v1442_v63, 2 }
  0xd7   :  { %v181_v5 = vpop.f32.mrf.mxu0  ;;  %534 = vmatpush.bf16.msrb.mxu1 %v1651_v10 }
  0xd8   :  { %v182_v6 = vadd.f32 %v1828_v19, %v181_v5 }
  0xda   :  { %v201_v7 = vmax.f32 %v182_v6, 0.0 }
  0xdc   :  { %v213_v8 = vpack.c.bf16 %v201_v7, %v201_v7 }
  0xdd   :  { %v385_v9 = vld [vmem:[#allocation2 + $0x18] sm:$0xf] }
  0xde   :  { %226 = vst.msk [vmem:[#allocation2 + $0x1c] sm:$0xf] %vm218_vm2, %v213_v8  ;;  %1360 = vmatmul.msk.bf16.vlgmr.msrb.gmra.mxu3 %vm244_vm3, %v385_v9  ;;  %v1372_v16 = vld [vmem:[#allocation2 + $0x18] sm:$0xe] }
  0xdf   :  { %v184_v11 = vpop.f32.mrf.mxu0  ;;  %588 = vmatpush.bf16.msrb.mxu3 %v1653_v14  ;;  %v1394_v42 = vld [vmem:[#allocation2 + $0x18] sm:$0xc] }
  0xe0   :  { %v185_v12 = vadd.f32 %v1828_v19, %v184_v11 }
  0xe2   :  { %v202_v13 = vmax.f32 %v185_v12, 0.0 }
  0xe4   :  { %v214_v15 = vpack.c.bf16 %v202_v13, %v202_v13  ;;  %v1673_v13 = vld [vmem:[%s2032_s3 + $0xb8] sm:$0xff] }
  0xe5   :  { %v1646_v17 = vld [vmem:[#allocation2 + $0x18] sm:$0x10]  ;;  %v1488_v3 = vld [vmem:[#allocation2 + $0x1c] sm:$0xc] }
  0xe6   :  { %227 = vst.msk [vmem:[#allocation2 + $0x20] sm:$0xf] %vm218_vm2, %v214_v15  ;;  %v1373_v18 = vor.u32 %v1646_v17, %v1372_v16  ;;  %v1650_v40 = vld [vmem:[#allocation2 + $0x18] sm:$0x30]  ;;  %v1670_v17 = vld [vmem:[#allocation2 + $0x8] sm:$0x10] }
  0xe7   :  { %v186_v20 = vpop.f32.mrf.mxu0  ;;  %v1395_v45 = vor.u32 %v1650_v40, %v1394_v42  ;;  %v697_v6 = vld [vmem:[#allocation2 + $0x1c] sm:$0xf] }
  0xe8   :  { %v187_v22 = vadd.f32 %v1828_v19, %v186_v20  ;;  %v449_v23 = vrot.slane %v1373_v18, 1  ;;  %v1466_v9 = vld [vmem:[#allocation2 + $0x1c] sm:$0xe]  ;;  %v1513_v18 = vld [vmem:[#allocation2 + $0x8] sm:$0xe]  ;;  %v1675_v20 = vld [vmem:[%s2032_s3 + $0xc0] sm:$0xff] }
  0xe9   :  { %v517_v48 = vrot.slane %v1395_v45, 2 }
  0xea   :  { %v203_v24 = vmax.f32 %v187_v22, 0.0  ;;  %1378 = vmatmul.msk.bf16.vlgmr.msra.gmra.mxu2 %vm244_vm3, %v449_v23  ;;  %v1514_v22 = vor.u32 %v1670_v17, %v1513_v18  ;;  %v1554_v18 = vld [vmem:[%s2034_s5 + $0x18] sm:$0xf0] }
  0xeb   :  { %656 = vmatpush.bf16.msra.mxu2 %v1657_v21 }
  0xec   :  { %v215_v25 = vpack.c.bf16 %v203_v24, %v203_v24  ;;  %v917_v23 = vrot.slane %v1514_v22, 1 }
  0xed   :  { %v1666_v2 = vld [vmem:[#allocation2 + $0x1c] sm:$0x30] }
  0xee   :  { %228 = vst.msk [vmem:[#allocation2 + $0x24] sm:$0xf] %vm218_vm2, %v215_v25  ;;  %v1489_v5 = vor.u32 %v1666_v2, %v1488_v3  ;;  %v1662_v8 = vld [vmem:[#allocation2 + $0x1c] sm:$0x10] }
  0xef   :  { %v189_v26 = vpop.f32.mrf.mxu0  ;;  %v1467_v10 = vor.u32 %v1662_v8, %v1466_v9 }
  0xf0   :  { %v190_v27 = vadd.f32 %v1828_v19, %v189_v26  ;;  %v829_v7 = vrot.slane %v1489_v5, 2 }
  0xf1   :  { %v761_v14 = vrot.slane %v1467_v10, 1 }
  0xf2   :  { %v204_v28 = vmax.f32 %v190_v27, 0.0  ;;  %v853_v27 = vld [vmem:[#allocation2 + $0x8] sm:$0xf] }
  0xf4   :  { %v216_v30 = vpack.c.bf16 %v204_v28, %v204_v28 }
  0xf5   :  { %v412_v31 = vld [vmem:[#allocation2 + $0x24] sm:$0xf] }
  0xf6   :  { %229 = vst.msk [vmem:[#allocation2 + $0x28] sm:$0xf] %vm218_vm2, %v216_v30  ;;  %1367 = vmatmul.msk.bf16.vlgmr.msra.gmra.mxu1 %vm244_vm3, %v412_v31  ;;  %v1383_v38 = vld [vmem:[#allocation2 + $0x24] sm:$0xe]  ;;  %v880_v31 = vld [vmem:[#allocation2 + $0x14] sm:$0xf] }
  0xf7   :  { %v191_v32 = vpop.f32.mrf.mxu0  ;;  %622 = vmatpush.bf16.msra.mxu1 %v1655_v29 }
  0xf8   :  { %v192_v34 = vadd.f32 %v1828_v19, %v191_v32  ;;  %v1656_v19 = vld [vmem:[#allocation2 + $0x10] sm:$0x10] }
  0xf9   :  { %v1431_v49 = vor.u32 %v1656_v19, %v1430_v46 }
  0xfa   :  { %v205_v36 = vmax.f32 %v192_v34, 0.0  ;;  %1407 = vmatmul.msk.bf16.vlgmr.msrb.gmra.mxu2 %vm244_vm3, %v541_v35  ;;  %v1672_v34 = vld [vmem:[#allocation2 + $0x14] sm:$0x10] }
  0xfb   :  { %744 = vmatpush.bf16.msrb.mxu2 %v1661_v33  ;;  %v639_v51 = vrot.slane %v1431_v49, 1 }
  0xfc   :  { %v217_v37 = vpack.c.bf16 %v205_v36, %v205_v36  ;;  %v1524_v36 = vld [vmem:[#allocation2 + $0x14] sm:$0xe] }
  0xfd   :  { %v1648_v39 = vld [vmem:[#allocation2 + $0x24] sm:$0x10]  ;;  %v1477_v12 = vld [vmem:[#allocation2 + $0x28] sm:$0xe] }
  0xfe   :  { %230 = vst.msk [vmem:[#allocation2 + $0x2c] sm:$0xf] %vm218_vm2, %v217_v37  ;;  %v1384_v41 = vor.u32 %v1648_v39, %v1383_v38  ;;  %v724_v60 = vld [vmem:[#allocation2 + $0x28] sm:$0xf]  ;;  %v1525_v37 = vor.u32 %v1672_v34, %v1524_v36  ;;  %v1674_v38 = vld [vmem:[#allocation2 + $0x8] sm:$0x30] }
  0xff   :  { %v1535_v39 = vld [vmem:[#allocation2 + $0x8] sm:$0xc] }
 0x100   :  { %v483_v44 = vrot.slane %v1384_v41, 1  ;;  %v951_v40 = vrot.slane %v1525_v37, 1  ;;  %v1536_v41 = vor.u32 %v1674_v38, %v1535_v39  ;;  %v1695_v38 = vld [vmem:[%s2036_s7 + $0x78] sm:$0xff] }
 0x101   :  { %v1687_v39 = vld [vmem:[%s2036_s7 + $0x38] sm:$0xff]  ;;  %1225 = vmatpush.bf16.msrb.mxu0 %v1695_v38 }
 0x102   :  { %1389 = vmatmul.msk.bf16.vlgmr.msra.gmra.mxu3 %vm244_vm3, %v483_v44  ;;  %v985_v44 = vrot.slane %v1536_v41, 2  ;;  %v1694_v41 = vld [vmem:[%s2036_s7 + $0x70] sm:$0xff] }
 0x103   :  { %690 = vmatpush.bf16.msra.mxu3 %v1659_v43 }
 0x105   :  { %v1664_v11 = vld [vmem:[#allocation2 + $0x28] sm:$0x10]  ;;  %1226 = vmatpush.bf16.msrb.mxu0 %v1694_v41 }
 0x106   :  { %1400 = vmatmul.msk.bf16.vlgmr.msrb.gmra.mxu1 %vm244_vm3, %v517_v48  ;;  %v1478_v15 = vor.u32 %v1664_v11, %v1477_v12 }
 0x107   :  { %717 = vmatpush.bf16.msrb.mxu1 %v1660_v47 }
 0x108   :  { %v795_v21 = vrot.slane %v1478_v15, 1  ;;  %v1678_v15 = vld [vmem:[%s2034_s5 + $0x14] sm:$0xf] }
 0x10a   :  { %1436 = vmatmul.msk.bf16.vlgmr.msra.gmra.mxu2 %vm244_vm3, %v639_v51 }
 0x10b   :  { %846 = vmatpush.bf16.msra.mxu2 %v1667_v50 }
 0x112   :  { %1414 = vmatmul.msk.bf16.vlgmr.msrb.gmra.mxu3 %vm244_vm3, %v568_v56 }
 0x113   :  { %778 = vmatpush.bf16.msrb.mxu3 %v1663_v54 }
 0x116   :  { %1425 = vmatmul.msk.bf16.vlgmr.msra.gmra.mxu1 %vm244_vm3, %v605_v58 }
 0x117   :  { %812 = vmatpush.bf16.msra.mxu1 %v1665_v57 }
 0x11a   :  { %1461 = vmatmul.msk.bf16.vlgmr.msrb.gmra.mxu2 %vm244_vm3, %v724_v60 }
 0x11b   :  { %934 = vmatpush.bf16.msrb.mxu2 %v1671_v59 }
 0x122   :  { %1447 = vmatmul.msk.bf16.vlgmr.msra.gmra.mxu3 %vm244_vm3, %v673_v1 }
 0x123   :  { %873 = vmatpush.bf16.msra.mxu3 %v1668_v0 }
 0x126   :  { %1454 = vmatmul.msk.bf16.vlgmr.msrb.gmra.mxu1 %vm244_vm3, %v697_v6 }
 0x127   :  { %900 = vmatpush.bf16.msrb.mxu1 %v1669_v4 }
 0x12a   :  { %1494 = vmatmul.msk.bf16.vlgmr.msra.gmra.mxu2 %vm244_vm3, %v829_v7 }
 0x131   :  { %v279_v16 = vpop.f32.mrf.mxu2 }
 0x132   :  { %1472 = vmatmul.msk.bf16.vlgmr.msrb.gmra.mxu3 %vm244_vm3, %v761_v14  ;;  %v1679_v14 = vld [vmem:[%s2034_s5 + $0x14] sm:$0xf0] }
 0x133   :  { %968 = vmatpush.bf16.msrb.mxu3 %v1673_v13  ;;  %v1552_v13 = vld [vmem:[%s2034_s5 + $0x10] sm:$0xf] }
 0x134   :  { %v1553_v17 = vor.u32 %v1679_v14, %v1552_v13 }
 0x136   :  { %1483 = vmatmul.msk.bf16.vlgmr.msra.gmra.mxu1 %vm244_vm3, %v795_v21 }
 0x137   :  { %1002 = vmatpush.bf16.msra.mxu1 %v1675_v20  ;;  %v1557_v20 = vor.u32 %v1678_v15, %v1554_v18 }
 0x139   :  { %v281_v24 = vpop.f32.mrf.mxu2  ;;  %1069 = vmatpush.bf16.msra.mxu2 %v1557_v20 }
 0x13a   :  { %1519 = vmatmul.msk.bf16.vlgmr.msrb.gmra.mxu2 %vm244_vm3, %v917_v23 }
 0x13d   :  { %v312_v25 = vpop.f32.mrf.mxu3 }
 0x141   :  { %v380_v26 = vpop.f32.mrf.mxu2 }
 0x142   :  { %1501 = vmatmul.msk.bf16.vlgmr.msra.gmra.mxu3 %vm244_vm3, %v853_v27 }
 0x143   :  { %v257_v28 = vpop.f32.mrf.mxu1  ;;  %1212 = vmatpush.bf16.msra.mxu3 %v1687_v39 }
 0x144   :  { %v280_v29 = vadd.f32 %v279_v16, %v257_v28 }
 0x145   :  { %v314_v30 = vpop.f32.mrf.mxu3 }
 0x146   :  { %1508 = vmatmul.msk.bf16.vlgmr.msrb.gmra.mxu1 %vm244_vm3, %v880_v31  ;;  %v316_v32 = vadd.f32 %v312_v25, %v280_v29  ;;  %v1544_v29 = vld [vmem:[%s2034_s5] sm:$0xf]  ;;  %v1677_v30 = vld [vmem:[%s2034_s5 + $0x4] sm:$0xf0]  ;;  %v1676_v31 = vld [vmem:[%s2034_s5 + $0x4] sm:$0xf] }
 0x147   :  { %1056 = vmatpush.bf16.msrb.mxu1 %v1553_v17  ;;  %v1545_v34 = vor.u32 %v1677_v30, %v1544_v29 }
 0x149   :  { %v382_v33 = vpop.f32.mrf.mxu2 }
 0x14b   :  { %v259_v35 = vpop.f32.mrf.mxu1  ;;  %1057 = vmatpush.bf16.msrb.mxu1 %v1545_v34 }
 0x14c   :  { %v1546_v35 = vld [vmem:[%s2034_s5 + $0x8] sm:$0xf0] }
 0x14d   :  { %v1549_v36 = vor.u32 %v1676_v31, %v1546_v35 }
 0x14f   :  { %1070 = vmatpush.bf16.msra.mxu2 %v1549_v36 }
 0x152   :  { %1530 = vmatmul.msk.bf16.vlgmr.msrb.gmra.mxu3 %vm244_vm3, %v951_v40 }
 0x153   :  { %v346_v42 = vpop.f32.mrf.mxu1 }
 0x154   :  { %v350_v43 = vadd.f32 %v346_v42, %v316_v32 }
 0x156   :  { %1541 = vmatmul.msk.bf16.vlgmr.msra.gmra.mxu1 %vm244_vm3, %v985_v44  ;;  %v384_v45 = vadd.f32 %v380_v26, %v350_v43  ;;  %v1686_v43 = vld [vmem:[%s2036_s7 + $0x30] sm:$0xff] }
 0x157   :  { %1213 = vmatpush.bf16.msra.mxu3 %v1686_v43 }
 0x15b   :  { %v348_v19 = vpop.f32.mrf.mxu1 }
 0x161   :  { %v407_v46 = vpop.f32.mrf.mxu3 }
 0x162   :  { %v411_v47 = vadd.f32 %v407_v46, %v384_v45  ;;  %v1693_v46 = vld [vmem:[%s2036_s7 + $0x68] sm:$0xff] }
 0x163   :  { %1227 = vmatpush.bf16.msrb.mxu0 %v1693_v46 }
 0x169   :  { %v409_v48 = vpop.f32.mrf.mxu3 }
 0x16d   :  { %v468_v49 = vpop.f32.mrf.mxu2 }
 0x173   :  { %v434_v50 = vpop.f32.mrf.mxu1 }
 0x174   :  { %v438_v51 = vadd.f32 %v434_v50, %v411_v47  ;;  %v1685_v47 = vld [vmem:[%s2036_s7 + $0x28] sm:$0xff] }
 0x175   :  { %v470_v52 = vpop.f32.mrf.mxu2  ;;  %1214 = vmatpush.bf16.msra.mxu3 %v1685_v47 }
 0x176   :  { %v472_v53 = vadd.f32 %v468_v49, %v438_v51  ;;  %v1692_v49 = vld [vmem:[%s2036_s7 + $0x60] sm:$0xff] }
 0x177   :  { %v1684_v51 = vld [vmem:[%s2036_s7 + $0x20] sm:$0xff]  ;;  %1228 = vmatpush.bf16.msrb.mxu0 %v1692_v49 }
 0x179   :  { %1215 = vmatpush.bf16.msra.mxu3 %v1684_v51 }
 0x17b   :  { %v436_v54 = vpop.f32.mrf.mxu1 }
 0x17c   :  { %v1691_v54 = vld [vmem:[%s2036_s7 + $0x58] sm:$0xff] }
 0x17d   :  { %v563_v55 = vpop.f32.mrf.mxu2  ;;  %1229 = vmatpush.bf16.msrb.mxu0 %v1691_v54 }
 0x183   :  { %v536_v56 = vpop.f32.mrf.mxu1 }
 0x185   :  { %v502_v57 = vpop.f32.mrf.mxu3  ;;  %v565_v58 = vpop.f32.mrf.mxu2 }
 0x186   :  { %v506_v5 = vadd.f32 %v502_v57, %v472_v53  ;;  %v1690_v57 = vld [vmem:[%s2036_s7 + $0x50] sm:$0xff] }
 0x187   :  { %1230 = vmatpush.bf16.msrb.mxu0 %v1690_v57 }
 0x188   :  { %v540_v8 = vadd.f32 %v536_v56, %v506_v5 }
 0x18a   :  { %v567_v10 = vadd.f32 %v563_v55, %v540_v8  ;;  %v1683_v55 = vld [vmem:[%s2036_s7 + $0x18] sm:$0xff]  ;;  %v1680_v8 = vld [vmem:[%s2036_s7] sm:$0xff] }
 0x18b   :  { %v538_v59 = vpop.f32.mrf.mxu1  ;;  %1216 = vmatpush.bf16.msra.mxu3 %v1683_v55 }
 0x18c   :  { %v1682_v59 = vld [vmem:[%s2036_s7 + $0x10] sm:$0xff] }
 0x18d   :  { %v504_v60 = vpop.f32.mrf.mxu3  ;;  %v658_v61 = vpop.f32.mrf.mxu2 }
 0x18f   :  { %1217 = vmatpush.bf16.msra.mxu3 %v1682_v59 }
 0x193   :  { %v624_v62 = vpop.f32.mrf.mxu1 }
 0x195   :  { %v590_v63 = vpop.f32.mrf.mxu3  ;;  %v660_v0 = vpop.f32.mrf.mxu2 }
 0x196   :  { %v594_v16 = vadd.f32 %v590_v63, %v567_v10  ;;  %v1698_v63 = vld [vmem:[%s2033_s4] ss:$0 sm:$0xff]  ;;  %v1689_v0 = vld [vmem:[%s2036_s7 + $0x48] sm:$0xff] }
 0x197   :  { %1231 = vmatpush.bf16.msrb.mxu0 %v1689_v0  ;;  %v1020_v10 = vld [vmem:[%s2035_s6] sm:$0x3]  ;;  %s1726_s6 = smov [#allocation3]  }
 0x198   :  { %v628_v21 = vadd.f32 %v624_v62, %v594_v16  ;;  %v1023_v15 = vperm.slane %v1020_v10, 1  ;;  %s1244_s3 = sshll.u32 %s1726_s6, 4  ;;  %s1245_s3 = int_to_ptr.vmem [resolvable:$true] %s1244_s3 }
 0x19a   :  { %v662_v25 = vadd.f32 %v658_v61, %v628_v21 }
 0x19b   :  { %v626_v1 = vpop.f32.mrf.mxu1 }
 0x19d   :  { %v592_v2 = vpop.f32.mrf.mxu3  ;;  %v746_v3 = vpop.f32.mrf.mxu2 }
 0x1a3   :  { %v719_v4 = vpop.f32.mrf.mxu1 }
 0x1a5   :  { %v692_v6 = vpop.f32.mrf.mxu3  ;;  %v748_v7 = vpop.f32.mrf.mxu2 }
 0x1a6   :  { %v696_v26 = vadd.f32 %v692_v6, %v662_v25  ;;  %v1681_v7 = vld [vmem:[%s2036_s7 + $0x8] sm:$0xff] }
 0x1a7   :  { %1218 = vmatpush.bf16.msra.mxu3 %v1681_v7 }
 0x1a8   :  { %v723_v28 = vadd.f32 %v719_v4, %v696_v26 }
 0x1aa   :  { %v750_v37 = vadd.f32 %v746_v3, %v723_v28 }
 0x1ab   :  { %v721_v9 = vpop.f32.mrf.mxu1  ;;  %1219 = vmatpush.bf16.msra.mxu3 %v1680_v8 }
 0x1ac   :  { %v1688_v9 = vld [vmem:[%s2036_s7 + $0x40] sm:$0xff] }
 0x1ad   :  { %v694_v11 = vpop.f32.mrf.mxu3  ;;  %v848_v12 = vpop.f32.mrf.mxu2  ;;  %1232 = vmatpush.bf16.msrb.mxu0 %v1688_v9 }
 0x1ae   :  { %v1022_v11 = vperm.slane %v1020_v10, 0 }
 0x1b3   :  { %v814_v22 = vpop.f32.mrf.mxu1 }
 0x1b5   :  { %v780_v23 = vpop.f32.mrf.mxu3  ;;  %v850_v24 = vpop.f32.mrf.mxu2 }
 0x1b6   :  { %v784_v40 = vadd.f32 %v780_v23, %v750_v37  ;;  %v1699_v24 = vld [vmem:[%s2037_s8] ss:$0 sm:$0xff] }
 0x1b8   :  { %v818_v19 = vadd.f32 %v814_v22, %v784_v40 }
 0x1ba   :  { %v852_v48 = vadd.f32 %v848_v12, %v818_v19 }
 0x1bb   :  { %v816_v27 = vpop.f32.mrf.mxu1 }
 0x1bd   :  { %v782_v32 = vpop.f32.mrf.mxu3  ;;  %v936_v33 = vpop.f32.mrf.mxu2 }
 0x1c3   :  { %v902_v42 = vpop.f32.mrf.mxu1 }
 0x1c5   :  { %v875_v44 = vpop.f32.mrf.mxu3  ;;  %v938_v45 = vpop.f32.mrf.mxu2 }
 0x1c6   :  { %v879_v52 = vadd.f32 %v875_v44, %v852_v48 }
 0x1c8   :  { %v906_v56 = vadd.f32 %v902_v42, %v879_v52 }
 0x1ca   :  { %v940_v60 = vadd.f32 %v936_v33, %v906_v56 }
 0x1cb   :  { %v904_v50 = vpop.f32.mrf.mxu1 }
 0x1cd   :  { %v877_v53 = vpop.f32.mrf.mxu3 }
 0x1d3   :  { %v1004_v58 = vpop.f32.mrf.mxu1 }
 0x1d5   :  { %v970_v61 = vpop.f32.mrf.mxu3 }
 0x1d6   :  { %v974_v62 = vadd.f32 %v970_v61, %v940_v60 }
 0x1d8   :  { %v1008_v1 = vadd.f32 %v1004_v58, %v974_v62 }
 0x1da   :  { %v1013_v2 = vadd.f32 %v1698_v63, %v1008_v1 }
 0x1db   :  { %v1006_v3 = vpop.f32.mrf.mxu1 }
 0x1dc   :  { %v1014_v4 = vmax.f32 %v1013_v2, 0.0 }
 0x1dd   :  { %v972_v5 = vpop.f32.mrf.mxu3 }
 0x1de   :  { %v1015_v6 = vpack.c.bf16 %v1014_v4, %v1014_v4 }
 0x1e0   :  { %1558 = vmatmul.msk.bf16.vlgmr.msrb.gmra.mxu1 %vm1046_vm4, %v1015_v6  ;;  %1559 = vmatmul.msk.bf16.vlgmr.msra.gmra.mxu2 %vm1046_vm4, %v1015_v6 }
 0x25d   :  { %v1059_v12 = vpop.f32.mrf.mxu1 }
 0x25e   :  { %v1060_v13 = vadd.f32 %v1059_v12, %v1022_v11 }
 0x260   :  { %v1076_v14 = vmax.f32 %v1060_v13, 0.0 }
 0x262   :  { %v1078_v16 = vpack.c.bf16 %v1076_v14, %v1076_v14 }
 0x263   :  { %v1072_v17 = vpop.f32.mrf.mxu2 }
 0x264   :  { %v1073_v18 = vadd.f32 %v1072_v17, %v1023_v15  ;;  %1220 = vmatmul.bf16.vlgmr.msra.gmra.mxu3 %v1078_v16 }
 0x265   :  { %v1061_v20 = vpop.f32.mrf.mxu1 }
 0x266   :  { %v1077_v21 = vmax.f32 %v1073_v18, 0.0 }
 0x268   :  { %v1079_v22 = vpack.c.bf16 %v1077_v21, %v1077_v21 }
 0x26a   :  { %1233 = vmatmul.bf16.vlgmr.msrb.gmra.mxu0 %v1079_v22 }
 0x26b   :  { %v1074_v23 = vpop.f32.mrf.mxu2 }
 0x2e7   :  { %v1221_v25 = vpop.f32.mrf.mxu3  ;;  %v1234_v26 = vpop.f32.mrf.mxu0 }
 0x2e8   :  { %v1222_v27 = vadd.f32 %v1699_v24, %v1221_v25 }
 0x2ea   :  { %v1235_v28 = vadd.f32 %v1234_v26, %v1222_v27 }
 0x2ec   :  { %1238 = vst [vmem:[#allocation3] sm:$0x3] %v1235_v28 }
 0x2ed   :  { %1249 = dma.vmem_to_hbm [thread:$0]  %s1245_s3, 32, %s1247_s19, [#allocation4]  }
 0x2ef   :  { %v1223_v29 = vpop.f32.mrf.mxu3  ;;  %v1236_v30 = vpop.f32.mrf.mxu0 }
 0x2f0   :  { %1724 = dma.done.wait [#allocation4], 32  }
 0x2f1   :  { %1725 = vsyncadd [#allocation4], 4294967264 }
 0x2f2   :  { %1254 = vsyncpa [#allocation4], 1 }

</bundles_post_ra>
